<compile_context>
chip_gen: v7x
topology: tpu7x:2x2x1
jax: 0.10.0
libtpu: 0.0.40
codegen_flags: <defaults>
</compile_context>

<pallas_src>
import jax
import jax.numpy as jnp
from jax.experimental import pallas as pl
from jax.experimental.pallas import tpu as pltpu


def _round_up(n, m):
    return ((n + m - 1) // m) * m


def sine_mlp_kernel(x_ref, w1_ref, b1_ref, w2_ref, b2_ref, w3_ref, b3_ref, o_ref):
    # Transposed, lane-dense layout: batch on the lane (last) axis.
    x = x_ref[...]                                   # (2, TB)
    w1 = w1_ref[...]                                 # (64, 2)

    # fc1: K=2 -> two lane-broadcast FMAs on the VPU (avoids a degenerate MXU op).
    h1 = w1[:, 0:1] * x[0:1, :] + w1[:, 1:2] * x[1:2, :] + b1_ref[...]   # (64, TB)
    # dropout(p=0.1) is identity in eval mode
    h1 = jnp.maximum(h1, 0.0)

    # fc2: (8, 64) @ (64, TB) on the MXU, lane-dense along TB.
    h2 = jnp.dot(w2_ref[...], h1, preferred_element_type=jnp.float32) + b2_ref[...]
    h2 = jnp.maximum(h2, 0.0)                        # (8, TB)

    # fc3: out_features=1 -> 8-term weighted sum (VPU) + sublane reduce (XLU),
    # avoiding a 1-wide MXU result.  b3 is a scalar read from SMEM.
    out = jnp.sum(w3_ref[...] * h2, axis=0, keepdims=True) + b3_ref[0]   # (1, TB)
    o_ref[...] = out.astype(o_ref.dtype)


def sine_model_forward(x, w1, b1, w2, b2, w3, b3, *, tb=512):
    """x: (B, 2) float32 -> (B, 1) float32.

    Param layout: w1 (64,2), w2 (8,64) are (out, in) == PyTorch weight;
    w3 (8,1) is weight.T; b1 (64,1), b2 (8,1) are column biases; b3 has shape (1,).
    """
    B = x.shape[0]
    tb = min(tb, _round_up(B, 128))          # don't over-pad tiny batches
    b_pad = _round_up(B, tb)
    xT = jnp.pad(x.T, ((0, 0), (0, b_pad - B)))      # (2, b_pad), batch on lanes

    grid = (b_pad // tb,)
    const = lambda shape: pl.BlockSpec(shape, lambda i: (0, 0))  # VMEM-resident params

    out = pl.pallas_call(
        sine_mlp_kernel,
        out_shape=jax.ShapeDtypeStruct((1, b_pad), jnp.float32),
        grid=grid,
        in_specs=[
            pl.BlockSpec((2, tb), lambda i: (0, i)),             # x tile (pipelined)
            const(w1.shape), const(b1.shape),
            const(w2.shape), const(b2.shape),
            const(w3.shape),
            pl.BlockSpec(memory_space=pltpu.MemorySpace.SMEM),   # b3 scalar in SMEM
        ],
        out_specs=pl.BlockSpec((1, tb), lambda i: (0, i)),
        compiler_params=pltpu.CompilerParams(
            dimension_semantics=("parallel",),   # shard batch tiles across TCs (v7x)
        ),
    )(xT, w1, b1, w2, b2, w3, b3)

    return out[0, :B].reshape(B, 1)


def init_params(key):
    """nn.Linear default init: U(-1/sqrt(fan_in), 1/sqrt(fan_in))."""
    def unif(k, shape, fan_in):
        bound = 1.0 / jnp.sqrt(float(fan_in))
        return jax.random.uniform(k, shape, jnp.float32, -bound, bound)

    k = jax.random.split(key, 6)
    w1 = unif(k[0], (64, 2), 2)
    b1 = unif(k[1], (64, 1), 2)
    w2 = unif(k[2], (8, 64), 64)
    b2 = unif(k[3], (8, 1), 64)
    w3 = unif(k[4], (8, 1), 8)
    b3 = unif(k[5], (1,), 8)
    return w1, b1, w2, b2, w3, b3


def reference_forward(x, w1, b1, w2, b2, w3, b3):
    h1 = jnp.maximum(x @ w1.T + b1[:, 0], 0.0)   # (B, 64)
    h2 = jnp.maximum(h1 @ w2.T + b2[:, 0], 0.0)  # (B, 8)
    return h2 @ w3 + b3                          # (B, 1)


if __name__ == "__main__":
    key = jax.random.PRNGKey(0)
    kx, kx2, kp = jax.random.split(key, 3)
    params = init_params(kp)

    # Small-batch check (single tile, padded to 128 lanes).
    B = 8
    x = jax.random.normal(kx, (B, 2), dtype=jnp.float32)
    out = jax.block_until_ready(sine_model_forward(x, *params))
    ref = reference_forward(x, *params)
    assert out.shape == (B, 1)
    assert jnp.allclose(out, ref, atol=1e-5, rtol=1e-5), "Pallas kernel mismatch vs reference (B=8)"

    # Multi-tile check (grid > 1 with a ragged tail) to exercise the pipelined path.
    B2 = 640
    x2 = jax.random.normal(kx2, (B2, 2), dtype=jnp.float32)
    out2 = jax.block_until_ready(sine_model_forward(x2, *params))
    ref2 = reference_forward(x2, *params)
    assert out2.shape == (B2, 1)
    assert jnp.allclose(out2, ref2, atol=1e-5, rtol=1e-5), "Pallas kernel mismatch vs reference (B=640)"

    print("KERNEL_OK")
</pallas_src>

<mosaic_0001>
module attributes {stable_mosaic.version = 11 : i64} {
  func.func @sine_mlp_kernel(%arg0: i32, %arg1: memref<2x128xf32, #tpu.memory_space<vmem>>, %arg2: memref<64x2xf32, #tpu.memory_space<vmem>>, %arg3: memref<64x1xf32, #tpu.memory_space<vmem>>, %arg4: memref<8x64xf32, #tpu.memory_space<vmem>>, %arg5: memref<8x1xf32, #tpu.memory_space<vmem>>, %arg6: memref<8x1xf32, #tpu.memory_space<vmem>>, %arg7: memref<1xf32, #tpu.memory_space<smem>>, %arg8: memref<1x128xf32, #tpu.memory_space<vmem>>) attributes {dimension_semantics = [#tpu.dimension_semantics<parallel>], iteration_bounds = array<i64: 1>, scalar_prefetch = 0 : i64, scratch_operands = 0 : i64, tpu.core_type = #tpu.core_type<tc>, window_params = [{transform_indices = @transform_0, window_bounds = array<i64: 2, 128>}, {pipeline_mode = #tpu.pipeline_mode<synchronous>, transform_indices = @transform_1, window_bounds = array<i64: 64, 2>}, {pipeline_mode = #tpu.pipeline_mode<synchronous>, transform_indices = @transform_2, window_bounds = array<i64: 64, 1>}, {pipeline_mode = #tpu.pipeline_mode<synchronous>, transform_indices = @transform_3, window_bounds = array<i64: 8, 64>}, {pipeline_mode = #tpu.pipeline_mode<synchronous>, transform_indices = @transform_4, window_bounds = array<i64: 8, 1>}, {pipeline_mode = #tpu.pipeline_mode<synchronous>, transform_indices = @transform_5, window_bounds = array<i64: 8, 1>}, {transform_indices = @transform_6, window_bounds = array<i64: 1>}, {transform_indices = @transform_7, window_bounds = array<i64: 1, 128>}]} {
    %c0 = arith.constant 0 : index
    %c0_0 = arith.constant 0 : index
    %0 = vector.load %arg1[%c0, %c0_0] : memref<2x128xf32, #tpu.memory_space<vmem>>, vector<2x128xf32>
    %c0_1 = arith.constant 0 : index
    %c0_2 = arith.constant 0 : index
    %1 = vector.load %arg2[%c0_1, %c0_2] : memref<64x2xf32, #tpu.memory_space<vmem>>, vector<64x2xf32>
    %2 = vector.extract_strided_slice %1 {offsets = [0, 0], sizes = [64, 1], strides = [1, 1]} : vector<64x2xf32> to vector<64x1xf32>
    %3 = vector.extract_strided_slice %0 {offsets = [0, 0], sizes = [1, 128], strides = [1, 1]} : vector<2x128xf32> to vector<1x128xf32>
    %4 = vector.broadcast %2 : vector<64x1xf32> to vector<64x128xf32>
    %5 = vector.broadcast %3 : vector<1x128xf32> to vector<64x128xf32>
    %6 = arith.mulf %4, %5 : vector<64x128xf32>
    %7 = vector.extract_strided_slice %1 {offsets = [0, 1], sizes = [64, 1], strides = [1, 1]} : vector<64x2xf32> to vector<64x1xf32>
    %8 = vector.extract_strided_slice %0 {offsets = [1, 0], sizes = [1, 128], strides = [1, 1]} : vector<2x128xf32> to vector<1x128xf32>
    %9 = vector.broadcast %7 : vector<64x1xf32> to vector<64x128xf32>
    %10 = vector.broadcast %8 : vector<1x128xf32> to vector<64x128xf32>
    %11 = arith.mulf %9, %10 : vector<64x128xf32>
    %12 = arith.addf %6, %11 : vector<64x128xf32>
    %c0_3 = arith.constant 0 : index
    %c0_4 = arith.constant 0 : index
    %13 = vector.load %arg3[%c0_3, %c0_4] : memref<64x1xf32, #tpu.memory_space<vmem>>, vector<64x1xf32>
    %14 = vector.broadcast %13 : vector<64x1xf32> to vector<64x128xf32>
    %15 = arith.addf %12, %14 : vector<64x128xf32>
    %cst = arith.constant 0.000000e+00 : f32
    %16 = vector.broadcast %cst : f32 to vector<64x128xf32>
    %17 = arith.maximumf %15, %16 : vector<64x128xf32>
    %c0_5 = arith.constant 0 : index
    %c0_6 = arith.constant 0 : index
    %18 = vector.load %arg4[%c0_5, %c0_6] : memref<8x64xf32, #tpu.memory_space<vmem>>, vector<8x64xf32>
    %cst_7 = arith.constant dense<0.000000e+00> : vector<8x128xf32>
    %19 = tpu.matmul %18, %17, %cst_7 {dimension_numbers = #tpu.dot_dimension_numbers<[1], [0], [0], [1], [0, 0, 1, 1], [], []>} : vector<8x64xf32>, vector<64x128xf32>, vector<8x128xf32> -> vector<8x128xf32>
    %c0_8 = arith.constant 0 : index
    %c0_9 = arith.constant 0 : index
    %20 = vector.load %arg5[%c0_8, %c0_9] : memref<8x1xf32, #tpu.memory_space<vmem>>, vector<8x1xf32>
    %21 = vector.broadcast %20 : vector<8x1xf32> to vector<8x128xf32>
    %22 = arith.addf %19, %21 : vector<8x128xf32>
    %cst_10 = arith.constant 0.000000e+00 : f32
    %23 = vector.broadcast %cst_10 : f32 to vector<8x128xf32>
    %24 = arith.maximumf %22, %23 : vector<8x128xf32>
    %c0_11 = arith.constant 0 : index
    %c0_12 = arith.constant 0 : index
    %25 = vector.load %arg6[%c0_11, %c0_12] : memref<8x1xf32, #tpu.memory_space<vmem>>, vector<8x1xf32>
    %26 = vector.broadcast %25 : vector<8x1xf32> to vector<8x128xf32>
    %27 = arith.mulf %26, %24 : vector<8x128xf32>
    %cst_13 = arith.constant dense<0.000000e+00> : vector<128xf32>
    %28 = vector.multi_reduction <add>, %27, %cst_13 [0] : vector<8x128xf32> to vector<128xf32>
    %29 = vector.shape_cast %28 : vector<128xf32> to vector<1x128xf32>
    %c0_14 = arith.constant 0 : index
    %30 = memref.load %arg7[%c0_14] : memref<1xf32, #tpu.memory_space<smem>>
    %31 = vector.broadcast %30 : f32 to vector<1x128xf32>
    %32 = arith.addf %29, %31 : vector<1x128xf32>
    %c0_15 = arith.constant 0 : index
    %c0_16 = arith.constant 0 : index
    %33 = vector.load %arg8[%c0_15, %c0_16] : memref<1x128xf32, #tpu.memory_space<vmem>>, vector<1x128xf32>
    tpu.vector_store %arg8[%c0_15, %c0_16], %32 {strides = array<i32>} : memref<1x128xf32, #tpu.memory_space<vmem>>, vector<1x128xf32>,
    return
  }
  func.func @transform_0(%arg0: i32) -> (i32, i32) {
    %c0_i32 = arith.constant 0 : i32
    %c0_i32_0 = arith.constant 0 : i32
    return %c0_i32, %arg0 : i32, i32
  }
  func.func @transform_1(%arg0: i32) -> (i32, i32) {
    %c0_i32 = arith.constant 0 : i32
    %c0_i32_0 = arith.constant 0 : i32
    %c0_i32_1 = arith.constant 0 : i32
    return %c0_i32, %c0_i32_0 : i32, i32
  }
  func.func @transform_2(%arg0: i32) -> (i32, i32) {
    %c0_i32 = arith.constant 0 : i32
    %c0_i32_0 = arith.constant 0 : i32
    %c0_i32_1 = arith.constant 0 : i32
    return %c0_i32, %c0_i32_0 : i32, i32
  }
  func.func @transform_3(%arg0: i32) -> (i32, i32) {
    %c0_i32 = arith.constant 0 : i32
    %c0_i32_0 = arith.constant 0 : i32
    %c0_i32_1 = arith.constant 0 : i32
    return %c0_i32, %c0_i32_0 : i32, i32
  }
  func.func @transform_4(%arg0: i32) -> (i32, i32) {
    %c0_i32 = arith.constant 0 : i32
    %c0_i32_0 = arith.constant 0 : i32
    %c0_i32_1 = arith.constant 0 : i32
    return %c0_i32, %c0_i32_0 : i32, i32
  }
  func.func @transform_5(%arg0: i32) -> (i32, i32) {
    %c0_i32 = arith.constant 0 : i32
    %c0_i32_0 = arith.constant 0 : i32
    %c0_i32_1 = arith.constant 0 : i32
    return %c0_i32, %c0_i32_0 : i32, i32
  }
  func.func @transform_6(%arg0: i32) -> i32 {
    %c0_i32 = arith.constant 0 : i32
    %c0_i32_0 = arith.constant 0 : i32
    return %c0_i32 : i32
  }
  func.func @transform_7(%arg0: i32) -> (i32, i32) {
    %c0_i32 = arith.constant 0 : i32
    %c0_i32_0 = arith.constant 0 : i32
    return %c0_i32, %arg0 : i32, i32
  }
}

</mosaic_0001>

<bundles_post_ra>
// kernel: tpu_custom_call.1
= control target key start
LH: loop header
LB: loop body
LE: loop exit
PB: predicated region body
PF: predicated region fallthrough
CT: control target
= control target key end

     0   :  { %v399_v2 = vmov 1   ;;  %s524_s0 = inlined_call_operand.vmem [shape: f32[2,128], index: 0, kind: input, shape index: {}]   ;;  %s525_s1 = inlined_call_operand.vmem [shape: f32[64,2], index: 1, kind: input, shape index: {}]   ;;  %s526_s2 = inlined_call_operand.vmem [shape: f32[64,1], index: 2, kind: input, shape index: {}]   ;;  %s527_s3 = inlined_call_operand.vmem [shape: f32[8,64], index: 3, kind: input, shape index: {}]   ;;  %s528_s4 = inlined_call_operand.vmem [shape: f32[8,1], index: 4, kind: input, shape index: {}]   ;;  %s529_s5 = inlined_call_operand.vmem [shape: f32[8,1], index: 5, kind: input, shape index: {}]   ;;  %s530_s6 = inlined_call_operand.<no memory space> [shape: f32[1], index: 6, kind: input, shape index: {}]   ;;  %s531_s7 = inlined_call_operand.hbm [shape: f32[1,128], index: 7, kind: output, shape index: {}]  }
   0x1   :  { %v31_v0 = vld [vmem:[%s525_s1 + $0x10] sm:$0xff]  ;;  %v29_v1 = vld [vmem:[%s525_s1] sm:$0xff]  ;;  %367 = vset.pattern.permute.xlu0 %v399_v2  ;;  %365 = vset.pattern.permute.xlu1 %v399_v2  ;;  %v30_v4 = vld [vmem:[%s525_s1 + $0x8] sm:$0xff] }
   0x2   :  { %98 = vperm.xlu0 %367, %v31_v0   ;;  %90 = vperm.xlu1 %365, %v29_v1   ;;  %v33_v3 = vld [vmem:[%s525_s1 + $0x20] sm:$0xff] }
   0x6   :  { %106 = vperm.xlu0 %367, %v33_v3   ;;  %94 = vperm.xlu1 %365, %v30_v4  }
   0x7   :  { %13 = vsyncpa [#allocation4], 0  ;;  %v35_v5 = vld [vmem:[%s525_s1 + $0x30] sm:$0xff]  ;;  %v32_v6 = vld [vmem:[%s525_s1 + $0x18] sm:$0xff]  ;;  %v400_v7 = vmov 0   ;;  %v401_v13 = vmov 0.0|0.0   ;;  %v77_v24 = vlaneseq }
   0x8   :  { %v141_v8 = vld [vmem:[%s526_s2] sm:$0xff]  ;;  %v142_v9 = vld [vmem:[%s526_s2 + $0x8] sm:$0xff]  ;;  %v144_v11 = vld [vmem:[%s526_s2 + $0x18] sm:$0xff]  ;;  %347 = vmatprep.subr.bf16.mxu0 %v401_v13  ;;  %vm402_vm0 = vmmov 0   ;;  %v403_v21 = vmov 0.0   ;;  %vm212_vm1 = vcmask 523264  }
   0x9   :  { %v34_v10 = vld [vmem:[%s525_s1 + $0x28] sm:$0xff]  ;;  %v143_v14 = vld [vmem:[%s526_s2 + $0x10] sm:$0xff]  ;;  %v206_v15 = vld [vmem:[%s528_s4] sm:$0xff]  ;;  %344 = vmatprep.mubr.msk.f32.mxu0 %vm402_vm0, %v403_v21  ;;  %v78_v27 = vshrl.u32 %v77_v24, 7  ;;  %s404_s15 = smov [#allocation3]  }
   0xa   :  { %114 = vperm.xlu0 %367, %v35_v5   ;;  %366 = vset.pattern.permute.xlu1 %v400_v7  ;;  %v146_v12 = vld [vmem:[%s526_s2 + $0x28] sm:$0xff]  ;;  %v36_v16 = vld [vmem:[%s525_s1 + $0x38] sm:$0xff]  ;;  %v145_v17 = vld [vmem:[%s526_s2 + $0x20] sm:$0xff] }
   0xb   :  { %54 = vperm.xlu1 %366, %v32_v6   ;;  %v147_v18 = vld [vmem:[%s526_s2 + $0x30] sm:$0xff]  ;;  %v148_v19 = vld [vmem:[%s526_s2 + $0x38] sm:$0xff]  ;;  %v287_v20 = vld [vmem:[%s529_s5] sm:$0xff]  ;;  %v123_v30 = vsub.s32 1, %v78_v27  ;;  %v79_v31 = vsub.s32 0, %v78_v27 }
   0xc   :  { %v28_v32 = vld [vmem:[%s524_s0] sm:$0x3] }
   0xd   :  { %v124_v35 = vrot.slane %v28_v32, %v123_v30  ;;  %v80_v36 = vrot.slane %v28_v32, %v79_v31 }
   0xe   :  { %372 = vset.pattern.permute.xlu0 %v400_v7 }
   0xf   :  { %39 = vperm.xlu0 %372, %v29_v1   ;;  %368 = vset.pattern.permute.xlu1 %v399_v2 }
  0x10   :  { %102 = vperm.xlu1 %368, %v32_v6  }
  0x13   :  { %44 = vperm.xlu0 %372, %v30_v4  }
  0x14   :  { %369 = vset.pattern.permute.xlu1 %v400_v7 }
  0x15   :  { %151 = vperm.xlu1 %369, %v141_v8  }
  0x17   :  { %49 = vperm.xlu0 %372, %v31_v0  }
  0x19   :  { %59 = vperm.xlu1 %369, %v33_v3  }
  0x1b   :  { %156 = vperm.xlu0 %372, %v142_v9  }
  0x1d   :  { %64 = vperm.xlu1 %369, %v34_v10  }
  0x1f   :  { %166 = vperm.xlu0 %372, %v144_v11  }
  0x21   :  { %370 = vset.pattern.permute.xlu1 %v399_v2 }
  0x22   :  { %110 = vperm.xlu1 %370, %v34_v10  }
  0x23   :  { %176 = vperm.xlu0 %372, %v146_v12  }
  0x26   :  { %371 = vset.pattern.permute.xlu1 %v400_v7 }
  0x27   :  { %161 = vperm.xlu1 %371, %v143_v14   ;;  %209 = vperm.xlu0 %372, %v206_v15  }
  0x2b   :  { %69 = vperm.xlu1 %371, %v35_v5  }
  0x2f   :  { %74 = vperm.xlu1 %371, %v36_v16  }
  0x33   :  { %373 = vset.pattern.permute.xlu1 %v399_v2 }
  0x34   :  { %118 = vperm.xlu1 %373, %v36_v16  }
  0x38   :  { %374 = vset.pattern.permute.xlu1 %v400_v7 }
  0x39   :  { %171 = vperm.xlu1 %374, %v145_v17  }
  0x3d   :  { %181 = vperm.xlu1 %374, %v147_v18  }
  0x41   :  { %186 = vperm.xlu1 %374, %v148_v19  }
  0x45   :  { %290 = vperm.xlu1 %374, %v287_v20  }
  0x81   :  { %v91_v22 = vpop.permute.xlu1 %90  ;;  %v99_v23 = vpop.permute.xlu0 %98 }
  0x82   :  { %v125_v40 = vmul.f32 %v124_v35, %v91_v22  ;;  %v127_v55 = vmul.f32 %v124_v35, %v99_v23 }
  0x85   :  { %v95_v25 = vpop.permute.xlu1 %94  ;;  %v107_v26 = vpop.permute.xlu0 %106 }
  0x86   :  { %v126_v43 = vmul.f32 %v124_v35, %v95_v25  ;;  %v129_v8 = vmul.f32 %v124_v35, %v107_v26 }
  0x89   :  { %v115_v28 = vpop.permute.xlu0 %114 }
  0x8a   :  { %v55_v29 = vpop.permute.xlu1 %54  ;;  %v131_v19 = vmul.f32 %v124_v35, %v115_v28  ;;  %v205_v28 = vld [vmem:[%s527_s3] sm:$0xff]  ;;  %s310_s3 = sshll.u32 %s404_s15, 4  ;;  %s311_s3 = int_to_ptr.vmem [resolvable:$true] %s310_s3 }
  0x8b   :  { %v84_v56 = vmul.f32 %v80_v36, %v55_v29  ;;  %s375_s16 = scalar_lea.vmem %s311_s3, 16  ;;  %s379_s17 = scalar_lea.vmem %s311_s3, 32 }
  0x8c   :  { %p376_p0 = scmp.ne.s32.totalorder %s311_s3, %s375_s16  ;;  %p380_p1 = scmp.lt.s32.totalorder %s311_s3, %s311_s3 }
  0x8d   :  { %p381_p2 = scmp.lt.s32.totalorder %s379_s17, %s375_s16 }
  0x8e   :  { %v40_v33 = vpop.permute.xlu0 %39 }
  0x8f   :  { %v103_v34 = vpop.permute.xlu1 %102  ;;  %v81_v38 = vmul.f32 %v80_v36, %v40_v33  ;;  %p382_p3 = por %p381_p2, %p380_p1 }
  0x90   :  { %v128_v53 = vmul.f32 %v124_v35, %v103_v34 }
  0x91   :  { %v133_v44 = vadd.f32 %v125_v40, %v81_v38  ;;  %p383_p4 = pnand %p382_p3, %p376_p0 }
  0x92   :  { %v45_v37 = vpop.permute.xlu0 %44  ;;  %v136_v60 = vadd.f32 %v128_v53, %v84_v56 }
  0x93   :  { %v82_v41 = vmul.f32 %v80_v36, %v45_v37 }
  0x94   :  { %v152_v39 = vpop.permute.xlu1 %151 }
  0x95   :  { %v189_v46 = vadd.f32 %v152_v39, %v133_v44  ;;  %v134_v47 = vadd.f32 %v126_v43, %v82_v41 }
  0x96   :  { %v50_v42 = vpop.permute.xlu0 %49 }
  0x97   :  { %v197_v51 = vmax.f32 %v189_v46, 0.0  ;;  %v83_v57 = vmul.f32 %v80_v36, %v50_v42  ;;  %v301_v46 = vstv %s530_s6 }
  0x98   :  { %v60_v45 = vpop.permute.xlu1 %59 }
  0x99   :  { %v135_v62 = vadd.f32 %v127_v55, %v83_v57  ;;  %v85_v9 = vmul.f32 %v80_v36, %v60_v45 }
  0x9a   :  { %v157_v48 = vpop.permute.xlu0 %156 }
  0x9b   :  { %v190_v49 = vadd.f32 %v157_v48, %v134_v47  ;;  %v137_v15 = vadd.f32 %v129_v8, %v85_v9 }
  0x9c   :  { %v65_v50 = vpop.permute.xlu1 %64 }
  0x9d   :  { %v198_v52 = vmax.f32 %v190_v49, 0.0  ;;  %v86_v7 = vmul.f32 %v80_v36, %v65_v50 }
  0x9e   :  { %v167_v59 = vpop.permute.xlu0 %166 }
  0x9f   :  { %v348_v54 = vpack.c.bf16 %v198_v52, %v197_v51  ;;  %v192_v61 = vadd.f32 %v167_v59, %v136_v60 }
  0xa1   :  { %v111_v58 = vpop.permute.xlu1 %110  ;;  %349 = vmatpush3.bf16.msra.mxu0 %v348_v54  ;;  %v200_v1 = vmax.f32 %v192_v61, 0.0 }
  0xa2   :  { %350 = vmatprep.subr.bf16.mxu0 %v401_v13  ;;  %v130_v6 = vmul.f32 %v124_v35, %v111_v58  ;;  %v177_v12 = vpop.permute.xlu0 %176 }
  0xa4   :  { %v138_v10 = vadd.f32 %v130_v6, %v86_v7 }
  0xa6   :  { %v162_v63 = vpop.permute.xlu1 %161  ;;  %v194_v14 = vadd.f32 %v177_v12, %v138_v10 }
  0xa7   :  { %v191_v0 = vadd.f32 %v162_v63, %v135_v62 }
  0xa8   :  { %v202_v20 = vmax.f32 %v194_v14, 0.0 }
  0xa9   :  { %v199_v2 = vmax.f32 %v191_v0, 0.0 }
  0xaa   :  { %v70_v3 = vpop.permute.xlu1 %69 }
  0xab   :  { %v351_v4 = vpack.c.bf16 %v200_v1, %v199_v2  ;;  %v87_v17 = vmul.f32 %v80_v36, %v70_v3 }
  0xad   :  { %352 = vmatpush3.bf16.msra.mxu0 %v351_v4  ;;  %v139_v27 = vadd.f32 %v131_v19, %v87_v17 }
  0xae   :  { %v75_v5 = vpop.permute.xlu1 %74  ;;  %353 = vmatprep.subr.bf16.mxu0 %v401_v13 }
  0xaf   :  { %v88_v24 = vmul.f32 %v80_v36, %v75_v5 }
  0xb3   :  { %v119_v11 = vpop.permute.xlu1 %118 }
  0xb4   :  { %v132_v21 = vmul.f32 %v124_v35, %v119_v11  ;;  %v210_v35 = vpop.permute.xlu0 %209 }
  0xb6   :  { %v140_v26 = vadd.f32 %v132_v21, %v88_v24 }
  0xb8   :  { %v172_v16 = vpop.permute.xlu1 %171 }
  0xb9   :  { %v193_v18 = vadd.f32 %v172_v16, %v137_v15 }
  0xbb   :  { %v201_v22 = vmax.f32 %v193_v18, 0.0 }
  0xbc   :  { %v182_v23 = vpop.permute.xlu1 %181 }
  0xbd   :  { %v354_v25 = vpack.c.bf16 %v202_v20, %v201_v22  ;;  %v195_v29 = vadd.f32 %v182_v23, %v139_v27 }
  0xbf   :  { %355 = vmatpush3.bf16.msra.mxu0 %v354_v25  ;;  %v203_v32 = vmax.f32 %v195_v29, 0.0 }
  0xc0   :  { %v187_v30 = vpop.permute.xlu1 %186  ;;  %356 = vmatprep.subr.bf16.mxu0 %v401_v13 }
  0xc1   :  { %v196_v31 = vadd.f32 %v187_v30, %v140_v26 }
  0xc3   :  { %v204_v33 = vmax.f32 %v196_v31, 0.0 }
  0xc4   :  { %v291_v40 = vpop.permute.xlu1 %290 }
  0xc5   :  { %v357_v34 = vpack.c.bf16 %v204_v33, %v203_v32 }
  0xc7   :  { %358 = vmatpush3.bf16.msra.mxu0 %v357_v34 }
  0xca   :  { %345 = vmatmul.mubr.msk.f32.vlgmr.msra.gmra.mrb[0].mxu0 %vm212_vm1, %v205_v28 }
 0x19d   :  { %v282_v36 = vpop.f32.mrb[0].mxu0 }
 0x19e   :  { %v283_v37 = vadd.f32 %v282_v36, %v210_v35  ;;  %v346_v38 = vpop.f32.mrb[1].mxu0 }
 0x1a0   :  { %v286_v39 = vmax.f32 %v283_v37, 0.0 }
 0x1a2   :  { %v293_v41 = vmul.f32 %v291_v40, %v286_v39 }
 0x1a4   :  { %v294_v42 = vrot.slane %v293_v41, 4 }
 0x1a6   :  { %v295_v13 = vadd.f32 %v294_v42, %v293_v41 }
 0x1a8   :  { %v296_v43 = vrot.slane %v295_v13, 2 }
 0x1aa   :  { %v297_v44 = vadd.f32 %v296_v43, %v295_v13 }
 0x1ac   :  { %v298_v45 = vrot.slane %v297_v44, 1 }
 0x1ae   :  { %v299_v47 = vadd.f32 %v298_v45, %v297_v44 }
 0x1b0   :  { %v302_v48 = vadd.f32 %v301_v46, %v299_v47 }
 0x1b2   :  { %303 = vst [vmem:[#allocation3] sm:$0x1] %v302_v48 }
 0x1b3   :  { %386 = shalt.err (!%p383_p4)
}
 0x1b4   :  { %s387_s20 = scalar_lea.hbm %s531_s7, 16 }
 0x1b5   :  { %p388_p5 = scmp.ne.s32.totalorder %s531_s7, %s387_s20  ;;  %p391_p6 = scmp.lt.u32.totalorder %s387_s20, %s531_s7 }
 0x1b7   :  { %p393_p7 = pnand %p391_p6, %p388_p5 }
 0x1b9   :  { %396 = shalt.err (!%p393_p7)
}
 0x1ba   :  { %313 = dma.vmem_to_hbm [thread:$0]  %s311_s3, 16, %s531_s7, [#allocation4]  }
 0x1bb   :  { %397 = dma.done.wait [#allocation4], 16  }
 0x1bc   :  { %398 = vsyncadd [#allocation4], 4294967280 }
 0x1bd   :  { %317 = vsyncpa [#allocation4], 1 }

</bundles_post_ra>
